<compile_context>
chip_gen: v7x
topology: tpu7x:2x2x1
jax: 0.10.0
libtpu: 0.0.40
codegen_flags: <defaults>
</compile_context>

<pallas_src>
import math

import jax
import jax.numpy as jnp
from jax.experimental import pallas as pl
from jax.experimental.pallas import tpu as pltpu


def _dyt_kernel(alpha_ref, x_ref, w_ref, b_ref, o_ref):
    # alpha: (1,) f32 scalar in SMEM; x: (tm, Dp); w/b: (1, Dp) f32 broadcast rows.
    a = alpha_ref[0]
    x = x_ref[...].astype(jnp.float32)          # compute in f32; cast only at store
    y = jnp.tanh(x * a) * w_ref[...] + b_ref[...]   # tanh -> EUP, mul/add -> VPU
    o_ref[...] = y.astype(o_ref.dtype)


def _round_up(v, m):
    return ((v + m - 1) // m) * m


def dyt_forward(x, alpha, weight, bias):
    """DyT forward: tanh(alpha * x) * weight + bias over the last dim.

    x: (..., D); alpha: (1,); weight/bias: (D,).  Returns same shape/dtype as x.
    """
    orig_shape = x.shape
    orig_dtype = x.dtype
    D = orig_shape[-1]
    N = x.size
    M = N // D
    itemsize = jnp.dtype(orig_dtype).itemsize
    sub = max(8, 32 // itemsize)                # sublane multiple: 8 f32, 16 bf16

    # Parameters stay f32 (SMEM is 32-bit scalar memory; f32 math matches reference).
    alpha_f = jnp.asarray(alpha, dtype=jnp.float32).reshape(1)
    w_f = jnp.asarray(weight, dtype=jnp.float32)
    b_f = jnp.asarray(bias, dtype=jnp.float32)

    # ---------------- lane-dense layout ----------------
    # Re-row the flattened tensor so the last dim is a multiple of 128 (widened up to
    # 2048 lanes).  Weight/bias are tiled once in the wrapper to the widened width.
    W = (D * 128) // math.gcd(D, 128)           # lcm(D, 128): multiple of 128 and of D
    use_flat = (W * itemsize) <= 256 * 1024     # skip only for huge poorly-divisible D
    if use_flat:
        while W * 2 <= 2048 and W * 2 <= max(N, 128):
            W *= 2                              # widen lanes: fewer/larger DMAs
        fold = W // D
        rows = pl.cdiv(N, W)
        Npad = rows * W
        x2 = x.reshape(-1)
        if Npad != N:
            x2 = jnp.pad(x2, (0, Npad - N))     # pad at most one row
        x2 = x2.reshape(rows, W)
        w2 = jnp.tile(w_f, fold).reshape(1, W)
        b2 = jnp.tile(b_f, fold).reshape(1, W)
        Mr, Dp = rows, W
    else:
        # Natural layout; block last dim equals full D (legal) -> only the final
        # sub-vreg lanes get masked stores.
        x2 = x.reshape(M, D)
        w2 = w_f.reshape(1, D)
        b2 = b_f.reshape(1, D)
        Mr, Dp = M, D

    # ---------------- byte-budgeted tiling ----------------
    row_bytes = Dp * itemsize
    total_bytes = Mr * row_bytes
    if total_bytes <= (1 << 20) or Mr <= sub:
        # Tiny input: one block (pipelining / megacore buy nothing here).
        tm = Mr
        grid = (1,)
    else:
        budget = 2 << 20                        # ~2 MiB x-block (~85% of HBM roofline)
        tm = max(sub, (budget // row_bytes) // sub * sub)
        # Guarantee >= 4 grid steps: enables prefetch/writeback overlap everywhere and
        # megacore sharding of the "parallel" axis on v7x.
        tm = min(tm, max(sub, _round_up(pl.cdiv(Mr, 4), sub)))
        grid = (pl.cdiv(Mr, tm),)

    # Only raise the scoped-VMEM limit if the resident footprint actually needs it
    # (x + out blocks, double-buffered, plus the two (1, Dp) f32 param rows).
    est_vmem = 4 * tm * Dp * itemsize + 4 * Dp * 4 + (1 << 16)
    cp_kwargs = dict(dimension_semantics=("parallel",))
    if est_vmem > 12 * 1024 * 1024:
        cp_kwargs["vmem_limit_bytes"] = min(est_vmem + (4 << 20), 64 * 1024 * 1024)

    out = pl.pallas_call(
        _dyt_kernel,
        out_shape=jax.ShapeDtypeStruct((Mr, Dp), orig_dtype),
        grid=grid,
        in_specs=[
            pl.BlockSpec(memory_space=pltpu.MemorySpace.SMEM),   # alpha scalar (f32)
            pl.BlockSpec((tm, Dp), lambda i: (i, 0)),            # x tile
            pl.BlockSpec((1, Dp), lambda i: (0, 0)),             # weight (broadcast)
            pl.BlockSpec((1, Dp), lambda i: (0, 0)),             # bias   (broadcast)
        ],
        out_specs=pl.BlockSpec((tm, Dp), lambda i: (i, 0)),
        compiler_params=pltpu.CompilerParams(**cp_kwargs),
    )(alpha_f, x2, w2, b2)

    if use_flat:
        return out.reshape(-1)[:N].reshape(orig_shape)
    return out.reshape(orig_shape)


def _ref(x, alpha, weight, bias):
    y = jnp.tanh(alpha[0] * x.astype(jnp.float32)) * weight + bias
    return y.astype(x.dtype)


if __name__ == "__main__":
    key = jax.random.PRNGKey(0)
    k_x, k_w, k_b, k_x2, k_x3, k_x4 = jax.random.split(key, 6)

    # DyT parameters (PyTorch init: alpha=0.5, weight=1, bias=0; random affine here
    # so the correctness check is non-trivial).
    D = 32
    alpha = jnp.full((1,), 0.5, dtype=jnp.float32)
    weight = 1.0 + 0.1 * jax.random.normal(k_w, (D,), dtype=jnp.float32)
    bias = 0.1 * jax.random.normal(k_b, (D,), dtype=jnp.float32)

    # 1) Small shape consistent with a normalization layer: (batch=2, seq=8, feat=32).
    x = jax.random.normal(k_x, (2, 8, D), dtype=jnp.float32)
    out = jax.block_until_ready(dyt_forward(x, alpha, weight, bias))
    ref = _ref(x, alpha, weight, bias)
    assert out.shape == x.shape and out.dtype == x.dtype
    assert bool(jnp.all(jnp.isfinite(out)))
    assert bool(jnp.allclose(out, ref, atol=1e-5, rtol=1e-5))

    # 2) Medium shape: exercises the multi-block, byte-budgeted, lane-widened path.
    D2 = 512
    w2 = 1.0 + 0.1 * jax.random.normal(k_w, (D2,), dtype=jnp.float32)
    b2 = 0.1 * jax.random.normal(k_b, (D2,), dtype=jnp.float32)
    x2 = jax.random.normal(k_x2, (8, 512, D2), dtype=jnp.float32)
    out2 = jax.block_until_ready(dyt_forward(x2, alpha, w2, b2))
    assert bool(jnp.allclose(out2, _ref(x2, alpha, w2, b2), atol=1e-5, rtol=1e-5))

    # 3) Awkward sizes: exercises the flatten + single-row-pad path.
    D3 = 48
    w3 = 1.0 + 0.1 * jax.random.normal(k_w, (D3,), dtype=jnp.float32)
    b3 = 0.1 * jax.random.normal(k_b, (D3,), dtype=jnp.float32)
    x3 = jax.random.normal(k_x3, (3, 7, D3), dtype=jnp.float32)
    out3 = jax.block_until_ready(dyt_forward(x3, alpha, w3, b3))
    assert bool(jnp.allclose(out3, _ref(x3, alpha, w3, b3), atol=1e-5, rtol=1e-5))

    # 4) bf16 activations: f32 compute inside the kernel, cast only at the store.
    x4 = jax.random.normal(k_x4, (4, 64, D), dtype=jnp.bfloat16)
    out4 = jax.block_until_ready(dyt_forward(x4, alpha, weight, bias))
    assert out4.dtype == jnp.bfloat16
    assert bool(jnp.allclose(out4.astype(jnp.float32),
                             _ref(x4, alpha, weight, bias).astype(jnp.float32),
                             atol=1e-2, rtol=1e-2))

    print("KERNEL_OK")
</pallas_src>

<mosaic_0001>
module attributes {stable_mosaic.version = 11 : i64} {
  func.func @_dyt_kernel(%arg0: i32, %arg1: memref<1xf32, #tpu.memory_space<smem>>, %arg2: memref<1x512xf32, #tpu.memory_space<vmem>>, %arg3: memref<1x512xf32, #tpu.memory_space<vmem>>, %arg4: memref<1x512xf32, #tpu.memory_space<vmem>>, %arg5: memref<1x512xf32, #tpu.memory_space<vmem>>) attributes {dimension_semantics = [#tpu.dimension_semantics<parallel>], iteration_bounds = array<i64: 1>, scalar_prefetch = 0 : i64, scratch_operands = 0 : i64, tpu.core_type = #tpu.core_type<tc>, window_params = [{transform_indices = @transform_0, window_bounds = array<i64: 1>}, {transform_indices = @transform_1, window_bounds = array<i64: 1, 512>}, {pipeline_mode = #tpu.pipeline_mode<synchronous>, transform_indices = @transform_2, window_bounds = array<i64: 1, 512>}, {pipeline_mode = #tpu.pipeline_mode<synchronous>, transform_indices = @transform_3, window_bounds = array<i64: 1, 512>}, {transform_indices = @transform_4, window_bounds = array<i64: 1, 512>}]} {
    %c0 = arith.constant 0 : index
    %0 = memref.load %arg1[%c0] : memref<1xf32, #tpu.memory_space<smem>>
    %c0_0 = arith.constant 0 : index
    %c0_1 = arith.constant 0 : index
    %1 = vector.load %arg2[%c0_0, %c0_1] : memref<1x512xf32, #tpu.memory_space<vmem>>, vector<1x512xf32>
    %2 = vector.broadcast %0 : f32 to vector<1x512xf32>
    %3 = arith.mulf %1, %2 : vector<1x512xf32>
    %4 = math.tanh %3 : vector<1x512xf32>
    %c0_2 = arith.constant 0 : index
    %c0_3 = arith.constant 0 : index
    %5 = vector.load %arg3[%c0_2, %c0_3] : memref<1x512xf32, #tpu.memory_space<vmem>>, vector<1x512xf32>
    %6 = arith.mulf %4, %5 : vector<1x512xf32>
    %c0_4 = arith.constant 0 : index
    %c0_5 = arith.constant 0 : index
    %7 = vector.load %arg4[%c0_4, %c0_5] : memref<1x512xf32, #tpu.memory_space<vmem>>, vector<1x512xf32>
    %8 = arith.addf %6, %7 : vector<1x512xf32>
    %c0_6 = arith.constant 0 : index
    %c0_7 = arith.constant 0 : index
    %9 = vector.load %arg5[%c0_6, %c0_7] : memref<1x512xf32, #tpu.memory_space<vmem>>, vector<1x512xf32>
    tpu.vector_store %arg5[%c0_6, %c0_7], %8 {strides = array<i32>} : memref<1x512xf32, #tpu.memory_space<vmem>>, vector<1x512xf32>,
    return
  }
  func.func @transform_0(%arg0: i32) -> i32 {
    %c0_i32 = arith.constant 0 : i32
    %c0_i32_0 = arith.constant 0 : i32
    return %c0_i32 : i32
  }
  func.func @transform_1(%arg0: i32) -> (i32, i32) {
    %c0_i32 = arith.constant 0 : i32
    %c0_i32_0 = arith.constant 0 : i32
    return %arg0, %c0_i32 : i32, i32
  }
  func.func @transform_2(%arg0: i32) -> (i32, i32) {
    %c0_i32 = arith.constant 0 : i32
    %c0_i32_0 = arith.constant 0 : i32
    %c0_i32_1 = arith.constant 0 : i32
    return %c0_i32, %c0_i32_0 : i32, i32
  }
  func.func @transform_3(%arg0: i32) -> (i32, i32) {
    %c0_i32 = arith.constant 0 : i32
    %c0_i32_0 = arith.constant 0 : i32
    %c0_i32_1 = arith.constant 0 : i32
    return %c0_i32, %c0_i32_0 : i32, i32
  }
  func.func @transform_4(%arg0: i32) -> (i32, i32) {
    %c0_i32 = arith.constant 0 : i32
    %c0_i32_0 = arith.constant 0 : i32
    return %arg0, %c0_i32 : i32, i32
  }
}

</mosaic_0001>

<bundles_post_ra>
// kernel: tpu_custom_call.1
= control target key start
LH: loop header
LB: loop body
LE: loop exit
PB: predicated region body
PF: predicated region fallthrough
CT: control target
= control target key end

     0   :  { %10 = vsyncpa [#allocation4], 0  ;;  %s172_s0 = inlined_call_operand.<no memory space> [shape: f32[1], index: 0, kind: input, shape index: {}]   ;;  %s173_s1 = inlined_call_operand.hbm [shape: f32[1,512], index: 1, kind: input, shape index: {}]   ;;  %s174_s2 = inlined_call_operand.vmem [shape: f32[1,512], index: 2, kind: input, shape index: {}]   ;;  %s175_s3 = inlined_call_operand.vmem [shape: f32[1,512], index: 3, kind: input, shape index: {}]   ;;  %s176_s4 = inlined_call_operand.hbm [shape: f32[1,512], index: 4, kind: output, shape index: {}]  }
   0x1   :  { %11 = vsyncpa [#allocation5], 0  ;;  %s112_s15 = smov [#allocation3]   ;;  %s64_s19 = scalar_lea.hbm %s173_s1, 64 }
   0x2   :  { %s20_s16 = sshll.u32 %s112_s15, 4  ;;  %p65_p0 = scmp.ne.s32.totalorder %s173_s1, %s64_s19  ;;  %s21_s16 = int_to_ptr.vmem [resolvable:$true] %s20_s16 }
   0x3   :  { %p68_p1 = scmp.lt.u32.totalorder %s64_s19, %s173_s1 }
   0x5   :  { %p70_p2 = pnand %p68_p1, %p65_p0 }
   0x7   :  { %73 = shalt.err (!%p70_p2)
}
   0x8   :  { %s74_s24 = scalar_lea.vmem %s21_s16, 64  ;;  %p79_p4 = scmp.lt.s32.totalorder %s21_s16, %s21_s16 }
   0x9   :  { %p75_p3 = scmp.ne.s32.totalorder %s21_s16, %s74_s24  ;;  %p80_p5 = scmp.lt.s32.totalorder %s74_s24, %s74_s24 }
   0xb   :  { %p81_p6 = por %p80_p5, %p79_p4 }
   0xd   :  { %p82_p7 = pnand %p81_p6, %p75_p3 }
   0xf   :  { %85 = shalt.err (!%p82_p7)
}
  0x10   :  { %23 = dma.hbm_to_vmem [thread:$0]  %s173_s1, 64, %s21_s16, [#allocation4]  }
  0x11   :  { %108 = dma.done.wait [#allocation4], 64  }
  0x12   :  { %109 = vsyncadd [#allocation4], 4294967232  ;;  %v33_v0 = vstv %s172_s0  ;;  %v32_v1 = vld [vmem:[#allocation3] sm:$0xf]  ;;  %v40_v4 = vlaneseq  ;;  %s113_s1 = smov [#allocation6]  }
  0x13   :  { %v34_v2 = vmul.f32 %v33_v0, %v32_v1  ;;  %v36_v3 = vld [vmem:[%s174_s2] sm:$0xf]  ;;  %s51_s7 = sshll.u32 %s113_s1, 4  ;;  %s52_s7 = int_to_ptr.vmem [resolvable:$true] %s51_s7 }
  0x14   :  { %v38_v6 = vld [vmem:[%s175_s3] sm:$0xf]  ;;  %vm42_vm0 = vcmp.lt.s32.totalorder %v40_v4, 512  ;;  %s86_s0 = scalar_lea.vmem %s52_s7, 64  ;;  %p91_p9 = scmp.lt.s32.totalorder %s52_s7, %s52_s7 }
  0x15   :  { %62 = vtanh.f32 %v34_v2  ;;  %p87_p8 = scmp.ne.s32.totalorder %s52_s7, %s86_s0  ;;  %p92_p10 = scmp.lt.s32.totalorder %s86_s0, %s86_s0 }
  0x17   :  { %p93_p11 = por %p92_p10, %p91_p9 }
  0x19   :  { %p94_p12 = pnand %p93_p11, %p87_p8 }
  0x1f   :  { %v63_v5 = vpop.eup %62 }
  0x20   :  { %v37_v7 = vmul.f32 %v63_v5, %v36_v3 }
  0x22   :  { %v39_v8 = vadd.f32 %v38_v6, %v37_v7 }
  0x24   :  { %44 = vst.msk [vmem:[#allocation6] sm:$0xf] %vm42_vm0, %v39_v8 }
  0x25   :  { %97 = shalt.err (!%p94_p12)
}
  0x26   :  { %s98_s9 = scalar_lea.hbm %s176_s4, 64 }
  0x27   :  { %p99_p13 = scmp.ne.s32.totalorder %s176_s4, %s98_s9  ;;  %p102_p0 = scmp.lt.u32.totalorder %s98_s9, %s176_s4 }
  0x29   :  { %p104_p1 = pnand %p102_p0, %p99_p13 }
  0x2b   :  { %107 = shalt.err (!%p104_p1)
}
  0x2c   :  { %54 = dma.vmem_to_hbm [thread:$0]  %s52_s7, 64, %s176_s4, [#allocation5]  }
  0x2d   :  { %110 = dma.done.wait [#allocation5], 64  }
  0x2e   :  { %111 = vsyncadd [#allocation5], 4294967232 }
  0x2f   :  { %58 = vsyncpa [#allocation4], 1 }
  0x30   :  { %59 = vsyncpa [#allocation5], 1 }

</bundles_post_ra>
